<compile_context>
chip_gen: v6e
topology: v6e:2x2x1
jax: 0.10.0
libtpu: 0.0.40
codegen_flags: <defaults>
</compile_context>

<pallas_src>
import functools

import jax
import jax.numpy as jnp
import numpy as np
from jax.experimental import pallas as pl
from jax.experimental.pallas import tpu as pltpu


def _coeffs(mode: int):
    if mode == 0:
        a = np.array([1.0, 0.0], np.float32)
        b = np.array([1.0, -0.85], np.float32)
    elif mode == 1:
        a = np.array([1.0, -1.31861375911, 0.32059452332], np.float32)
        b = np.array([0.95616638497, -1.31960414122, 0.36343775625], np.float32)
    else:
        raise ValueError(f"Invalid loss type {mode}.")
    # lfilter normalizes both coefficient vectors by a[0]
    return a / a[0], b / a[0]


def _msee_kernel(pred_ref, targ_ref, out_ref, *, b0, b1):
    t_len = pred_ref.shape[-1]

    # (1, T) coefficient rows, broadcast against the (block_b, T) block.  Folding the
    # boundary masks directly into the stencil coefficients avoids materializing any
    # full-block iota / mask temporaries (one row instead of block_b rows).
    col = jax.lax.broadcasted_iota(jnp.int32, (1, t_len), 1)
    is_first = col == 0
    is_last = col == t_len - 1
    c_center = jnp.where(is_last, b0 * b0, b0 * b0 + b1 * b1)  # (1, T) f32
    c_prev = jnp.where(is_first, 0.0, b0 * b1)                 # x[-1] = 0 at n = 0
    c_next = jnp.where(is_last, 0.0, b0 * b1)                  # y1[T] = 0 at n = T-1

    def preem(ref):
        v_raw = ref[...]  # input dtype (f32 or bf16)
        # Both lane rolls act on the raw (possibly bf16) input and are independent of
        # each other, so the XLU can issue them back-to-back; upcast to f32 afterwards.
        v_prev = pltpu.roll(v_raw, shift=1, axis=1).astype(jnp.float32)
        v_next = pltpu.roll(v_raw, shift=t_len - 1, axis=1).astype(jnp.float32)
        v = v_raw.astype(jnp.float32)
        z = c_center * v + c_prev * v_prev + c_next * v_next
        # clamp only after the (fused) backward pass, matching filtfilt(clamp=True)
        return jnp.clip(z, -1.0, 1.0)

    d = preem(pred_ref) - preem(targ_ref)
    dd = d * d

    # Lane-dense partial reduction: elementwise-accumulate the T/128 lane groups so
    # the XLU cross-lane reduce is skipped (XLU slot stays free for the rolls) and
    # the output store is an unmasked 128-lane-dense store.  The tiny final reduce
    # happens in plain JAX.
    acc = dd[:, 0:128]
    for k in range(1, t_len // 128):
        acc = acc + dd[:, k * 128:(k + 1) * 128]
    out_ref[...] = acc


def _choose_block_b(B, T, itemsize, vmem_budget_bytes=32 * 1024 * 1024,
                    target_grid_steps=8):
    """Rows per block: largest multiple of 8 whose estimated VMEM footprint fits the
    budget, capped so that the grid keeps ~target_grid_steps steps (both v7x
    TensorCores get work and the pipeline has iterations to overlap)."""
    # Per-element VMEM cost model: 2 inputs x 2 pipeline buffers (input dtype)
    # + 2 rolled copies (input dtype) + ~4 f32-sized in-kernel temporaries.
    per_elem_bytes = 6 * itemsize + 16
    max_rows = max(8, (vmem_budget_bytes // (T * per_elem_bytes)) // 8 * 8)
    rows_for_steps = max(8, (-(-B // target_grid_steps) + 7) // 8 * 8)
    return min(max_rows, rows_for_steps)


def msee_loss(predictions, targets, *, mode=0, block_b=None,
              vmem_budget_bytes=32 * 1024 * 1024, input_buffer_count=None):
    """MSeE forward pass.  predictions/targets: (B, T) arrays (f32 or bf16).

    bf16 inputs halve the HBM read traffic (the kernel upcasts to f32 internally),
    which is a near-2x end-to-end win on HBM-bandwidth-bound chips such as v5e.
    """
    a, b = _coeffs(mode)
    if not np.allclose(a[1:], 0.0):
        raise NotImplementedError(
            "Only the FIR pre-emphasis mode (mode=0) is implemented as a Pallas kernel."
        )
    predictions = jnp.asarray(predictions)
    targets = jnp.asarray(targets)
    B, T = predictions.shape
    assert targets.shape == (B, T)
    assert T % 128 == 0, "T must be a multiple of 128 (lane tiling)"

    itemsize = jnp.dtype(predictions.dtype).itemsize
    if block_b is None:
        block_b = _choose_block_b(B, T, itemsize, vmem_budget_bytes)

    # Relaxed divisibility: zero-pad the batch up to a multiple of block_b.  Zero rows
    # pre-emphasize to zero for both signals, so they contribute exactly 0 to the sum;
    # the mean still divides by the real B*T.
    padded_B = -(-B // block_b) * block_b
    if padded_B != B:
        pad = padded_B - B
        predictions = jnp.pad(predictions, ((0, pad), (0, 0)))
        targets = jnp.pad(targets, ((0, pad), (0, 0)))

    kernel = functools.partial(_msee_kernel, b0=float(b[0]), b1=float(b[1]))

    def in_spec():
        if input_buffer_count is None:
            return pl.BlockSpec((block_b, T), lambda i: (i, 0))
        # Optional deeper pipelining (e.g. Buffered(3) on v6e if an xprof trace still
        # shows exposed DMA after the compute trims).
        return pl.BlockSpec((block_b, T), lambda i: (i, 0),
                            pipeline_mode=pl.Buffered(input_buffer_count))

    partial_sums = pl.pallas_call(
        kernel,
        out_shape=jax.ShapeDtypeStruct((padded_B, 128), jnp.float32),
        grid=(padded_B // block_b,),
        in_specs=[in_spec(), in_spec()],
        out_specs=pl.BlockSpec((block_b, 128), lambda i: (i, 0)),
        compiler_params=pltpu.CompilerParams(
            dimension_semantics=("parallel",),
            vmem_limit_bytes=40 * 1024 * 1024,
        ),
        cost_estimate=pl.CostEstimate(
            flops=int(17 * padded_B * T),
            transcendentals=0,
            bytes_accessed=int(2 * padded_B * T * itemsize + padded_B * 128 * 4),
        ),
    )(predictions, targets)

    return jnp.sum(partial_sums) / float(B * T)


def _msee_reference(predictions, targets, *, mode=0):
    """Pure-JAX reference (explicit two-pass filtfilt) for correctness checking."""
    a, b = _coeffs(mode)
    b0, b1 = float(b[0]), float(b[1])

    def preem(x):
        zero = jnp.zeros_like(x[:, :1])
        x_prev = jnp.concatenate([zero, x[:, :-1]], axis=1)
        y1 = b0 * x + b1 * x_prev
        y1_next = jnp.concatenate([y1[:, 1:], zero], axis=1)
        return jnp.clip(b0 * y1 + b1 * y1_next, -1.0, 1.0)

    d = preem(predictions) - preem(targets)
    return jnp.mean(d * d)


if __name__ == "__main__":
    key = jax.random.PRNGKey(0)
    kp, kt = jax.random.split(key)
    B, T = 16, 256
    predictions = jax.random.uniform(kp, (B, T), jnp.float32, minval=-1.0, maxval=1.0)
    targets = jax.random.uniform(kt, (B, T), jnp.float32, minval=-1.0, maxval=1.0)

    # f32 inputs
    loss = msee_loss(predictions, targets, mode=0)
    jax.block_until_ready(loss)
    ref = _msee_reference(predictions, targets, mode=0)
    np.testing.assert_allclose(np.asarray(loss), np.asarray(ref), rtol=1e-5, atol=1e-6)

    # bf16 inputs (halved HBM read + XLU roll traffic); math is still f32 in-kernel.
    pred_bf16 = predictions.astype(jnp.bfloat16)
    targ_bf16 = targets.astype(jnp.bfloat16)
    loss_bf16 = msee_loss(pred_bf16, targ_bf16, mode=0)
    jax.block_until_ready(loss_bf16)
    ref_bf16 = _msee_reference(
        pred_bf16.astype(jnp.float32), targ_bf16.astype(jnp.float32), mode=0
    )
    np.testing.assert_allclose(
        np.asarray(loss_bf16), np.asarray(ref_bf16), rtol=1e-4, atol=1e-6
    )

    # Awkward batch size (not a multiple of 8): exercised via zero-row padding.
    B2, T2 = 10, 128
    k2p, k2t = jax.random.split(jax.random.PRNGKey(1))
    p2 = jax.random.uniform(k2p, (B2, T2), jnp.float32, minval=-1.0, maxval=1.0)
    t2 = jax.random.uniform(k2t, (B2, T2), jnp.float32, minval=-1.0, maxval=1.0)
    loss2 = msee_loss(p2, t2, mode=0)
    jax.block_until_ready(loss2)
    ref2 = _msee_reference(p2, t2, mode=0)
    np.testing.assert_allclose(np.asarray(loss2), np.asarray(ref2), rtol=1e-5, atol=1e-6)

    print("KERNEL_OK")
</pallas_src>

<mosaic_0001>
module attributes {stable_mosaic.version = 11 : i64} {
  func.func @_msee_kernel(%arg0: i32, %arg1: memref<8x256xf32, #tpu.memory_space<vmem>>, %arg2: memref<8x256xf32, #tpu.memory_space<vmem>>, %arg3: memref<8x128xf32, #tpu.memory_space<vmem>>) attributes {dimension_semantics = [#tpu.dimension_semantics<parallel>], iteration_bounds = array<i64: 2>, scalar_prefetch = 0 : i64, scratch_operands = 0 : i64, tpu.core_type = #tpu.core_type<tc>, window_params = [{transform_indices = @transform_0, window_bounds = array<i64: 8, 256>}, {transform_indices = @transform_1, window_bounds = array<i64: 8, 256>}, {transform_indices = @transform_2, window_bounds = array<i64: 8, 128>}]} {
    %0 = tpu.iota {dimensions = array<i32: 1>} : vector<1x256xi32>
    %c0_i32 = arith.constant 0 : i32
    %1 = vector.broadcast %c0_i32 : i32 to vector<1x256xi32>
    %2 = arith.cmpi eq, %0, %1 : vector<1x256xi32>
    %c255_i32 = arith.constant 255 : i32
    %3 = vector.broadcast %c255_i32 : i32 to vector<1x256xi32>
    %4 = arith.cmpi eq, %0, %3 : vector<1x256xi32>
    %cst = arith.constant 1.000000e+00 : f32
    %cst_0 = arith.constant 1.72250009 : f32
    %5 = vector.broadcast %cst : f32 to vector<1x256xf32>
    %6 = vector.broadcast %cst_0 : f32 to vector<1x256xf32>
    %7 = arith.select %4, %5, %6 : vector<1x256xi1>, vector<1x256xf32>
    %cst_1 = arith.constant 0.000000e+00 : f32
    %cst_2 = arith.constant -8.500000e-01 : f32
    %8 = vector.broadcast %cst_1 : f32 to vector<1x256xf32>
    %9 = vector.broadcast %cst_2 : f32 to vector<1x256xf32>
    %10 = arith.select %2, %8, %9 : vector<1x256xi1>, vector<1x256xf32>
    %cst_3 = arith.constant 0.000000e+00 : f32
    %cst_4 = arith.constant -8.500000e-01 : f32
    %11 = vector.broadcast %cst_3 : f32 to vector<1x256xf32>
    %12 = vector.broadcast %cst_4 : f32 to vector<1x256xf32>
    %13 = arith.select %4, %11, %12 : vector<1x256xi1>, vector<1x256xf32>
    %c0 = arith.constant 0 : index
    %c0_5 = arith.constant 0 : index
    %14 = vector.load %arg1[%c0, %c0_5] : memref<8x256xf32, #tpu.memory_space<vmem>>, vector<8x256xf32>
    %c1_i32 = arith.constant 1 : i32
    %15 = tpu.dynamic_rotate %14 by %c1_i32 dim 1 : vector<8x256xf32>, i32 -> vector<8x256xf32>
    %c255_i32_6 = arith.constant 255 : i32
    %16 = tpu.dynamic_rotate %14 by %c255_i32_6 dim 1 : vector<8x256xf32>, i32 -> vector<8x256xf32>
    %17 = vector.broadcast %7 : vector<1x256xf32> to vector<8x256xf32>
    %18 = arith.mulf %17, %14 : vector<8x256xf32>
    %19 = vector.broadcast %10 : vector<1x256xf32> to vector<8x256xf32>
    %20 = arith.mulf %19, %15 : vector<8x256xf32>
    %21 = arith.addf %18, %20 : vector<8x256xf32>
    %22 = vector.broadcast %13 : vector<1x256xf32> to vector<8x256xf32>
    %23 = arith.mulf %22, %16 : vector<8x256xf32>
    %24 = arith.addf %21, %23 : vector<8x256xf32>
    %cst_7 = arith.constant -1.000000e+00 : f32
    %cst_8 = arith.constant 1.000000e+00 : f32
    %25 = vector.broadcast %cst_7 : f32 to vector<8x256xf32>
    %26 = arith.maximumf %25, %24 : vector<8x256xf32>
    %27 = vector.broadcast %cst_8 : f32 to vector<8x256xf32>
    %28 = arith.minimumf %27, %26 : vector<8x256xf32>
    %c0_9 = arith.constant 0 : index
    %c0_10 = arith.constant 0 : index
    %29 = vector.load %arg2[%c0_9, %c0_10] : memref<8x256xf32, #tpu.memory_space<vmem>>, vector<8x256xf32>
    %c1_i32_11 = arith.constant 1 : i32
    %30 = tpu.dynamic_rotate %29 by %c1_i32_11 dim 1 : vector<8x256xf32>, i32 -> vector<8x256xf32>
    %c255_i32_12 = arith.constant 255 : i32
    %31 = tpu.dynamic_rotate %29 by %c255_i32_12 dim 1 : vector<8x256xf32>, i32 -> vector<8x256xf32>
    %32 = vector.broadcast %7 : vector<1x256xf32> to vector<8x256xf32>
    %33 = arith.mulf %32, %29 : vector<8x256xf32>
    %34 = vector.broadcast %10 : vector<1x256xf32> to vector<8x256xf32>
    %35 = arith.mulf %34, %30 : vector<8x256xf32>
    %36 = arith.addf %33, %35 : vector<8x256xf32>
    %37 = vector.broadcast %13 : vector<1x256xf32> to vector<8x256xf32>
    %38 = arith.mulf %37, %31 : vector<8x256xf32>
    %39 = arith.addf %36, %38 : vector<8x256xf32>
    %cst_13 = arith.constant -1.000000e+00 : f32
    %cst_14 = arith.constant 1.000000e+00 : f32
    %40 = vector.broadcast %cst_13 : f32 to vector<8x256xf32>
    %41 = arith.maximumf %40, %39 : vector<8x256xf32>
    %42 = vector.broadcast %cst_14 : f32 to vector<8x256xf32>
    %43 = arith.minimumf %42, %41 : vector<8x256xf32>
    %44 = arith.subf %28, %43 : vector<8x256xf32>
    %45 = arith.mulf %44, %44 : vector<8x256xf32>
    %46 = vector.extract_strided_slice %45 {offsets = [0, 0], sizes = [8, 128], strides = [1, 1]} : vector<8x256xf32> to vector<8x128xf32>
    %47 = vector.extract_strided_slice %45 {offsets = [0, 128], sizes = [8, 128], strides = [1, 1]} : vector<8x256xf32> to vector<8x128xf32>
    %48 = arith.addf %46, %47 : vector<8x128xf32>
    %c0_15 = arith.constant 0 : index
    %c0_16 = arith.constant 0 : index
    %49 = vector.load %arg3[%c0_15, %c0_16] : memref<8x128xf32, #tpu.memory_space<vmem>>, vector<8x128xf32>
    tpu.vector_store %arg3[%c0_15, %c0_16], %48 {strides = array<i32>} : memref<8x128xf32, #tpu.memory_space<vmem>>, vector<8x128xf32>,
    return
  }
  func.func @transform_0(%arg0: i32) -> (i32, i32) {
    %c0_i32 = arith.constant 0 : i32
    %c0_i32_0 = arith.constant 0 : i32
    return %arg0, %c0_i32 : i32, i32
  }
  func.func @transform_1(%arg0: i32) -> (i32, i32) {
    %c0_i32 = arith.constant 0 : i32
    %c0_i32_0 = arith.constant 0 : i32
    return %arg0, %c0_i32 : i32, i32
  }
  func.func @transform_2(%arg0: i32) -> (i32, i32) {
    %c0_i32 = arith.constant 0 : i32
    %c0_i32_0 = arith.constant 0 : i32
    return %arg0, %c0_i32 : i32, i32
  }
}

</mosaic_0001>

<bundles_post_ra>
// kernel: tpu_custom_call.1
= control target key start
LH: loop header
LB: loop body
LE: loop exit
PB: predicated region body
PF: predicated region fallthrough
CT: control target
= control target key end

     0   :  { %7 = vsyncpa [#allocation3], 0  ;;  %s809_s0 = inlined_call_operand.hbm [shape: f32[16,256], index: 0, kind: input, shape index: {}]   ;;  %s810_s1 = inlined_call_operand.hbm [shape: f32[16,256], index: 1, kind: input, shape index: {}]   ;;  %s811_s2 = inlined_call_operand.hbm [shape: f32[16,128], index: 2, kind: output, shape index: {}]  }
   0x1   :  { %9 = vsyncpa [#allocation3 + $0x1], 0 }
   0x2   :  { %10 = vsyncpa [#allocation6], 0 }
   0x3   :  { %12 = vsyncpa [#allocation6 + $0x1], 0 }
   0x4   :  { %13 = vsyncpa [#allocation4], 0 }
   0x5   :  { %15 = vsyncpa [#allocation4 + $0x1], 0  ;;  %s608_s9 = smov 0   ;;  %s610_s10 = smov 0  }
   0x6   :  { %s612_s11 = smov 0   ;;  %s614_s12 = smov 0  }
   0x7 LB: > { %s629_s13 = sadd.s32 4294967295, %s584_s12   ;;  %s382_s14 = sadd.s32 4294967294, %s584_s12   ;;  %s584_s12 = sphi %s614_s12, %s830_s12   ;;  %s580_s11 = sphi %s612_s11, %s829_s11   ;;  %s576_s10 = sphi %s610_s10, %s828_s10   ;;  %s572_s9 = sphi %s608_s9, %s827_s9  }
   0x8   : > { %s633_s15 = sadd.s32 1, %s584_s12   ;;  %s28_s16 = sadd.s32 1, %s580_s11 }
   0x9   : > { %s25_s17 = ssub.s32 %s584_s12, %s633_s15  ;;  %p35_p0 = scmp.ne.s32.totalorder %s580_s11, %s576_s10 }
   0xa   : > { %p26_p1 = scmp.eq.s32.totalorder %s25_s17, 0  ;;  %p36_p2 = scmp.eq.s32.totalorder %s584_s12, 0 }
   0xb   : > { %p41_p3 = scmp.ne.s32.totalorder %s576_s10, %s572_s9  ;;  %p42_p4 = scmp.eq.s32.totalorder %s629_s13, 0 }
   0xc   : > { %s645_s18 = scalar_select %p26_p1, %s580_s11, %s28_s16  }
   0xd   : > { %p647_p5 = por %p36_p2, %p35_p0  ;;  %p651_p6 = por %p42_p4, %p41_p3 }
   0xe   : > { %p91_p7 = scmp.eq.s32.totalorder %s629_s13, 1  ;;  %p97_p8 = scmp.eq.s32.totalorder %s382_s14, 1 }
   0xf   : > { %s815_s20 = scalar_select %p651_p6, 1, 0 }
  0x10   : > { %p422_p10 = scmp.lt.s32.totalorder %s584_s12, 2  ;;  %p658_p11 = por %p91_p7, %p35_p0 }
  0x11   : > { %p662_p12 = por %p97_p8, %p41_p3  ;;  %s667_s23 = sand.u32 1, %s580_s11  }
  0x12   : > { %s816_s21 = scalar_select %p658_p11, 1, 0 }
  0x13   : > { %s817_s22 = scalar_select %p662_p12, 1, 0 }
  0x14   : > { %s403_s24 = sshll.u32 %s584_s12, 8  ;;  %s385_s25 = sshll.u32 %s667_s23, 4 }
  0x15   : > { %s676_s28 = scalar_lea.hbm %s809_s0, %s403_s24  ;;  %s121_s29 = scalar_lea.vmem [#allocation2], %s385_s25 }
  0x16   : > { %s129_s30 = sshll.u32 %s121_s29, 4  ;;  %p682_p13 = pnand %p422_p10, %p647_p5  ;;  %s686_s30 = int_to_ptr.vmem [resolvable:$true] %s129_s30 }
  0x17   : > { %s118_s4 = scalar_lea.sflag [#allocation3], %s667_s23  ;;  %s460_s5 = scalar_lea.hbm %s676_s28, 256 }
  0x18   : > { %p461_p2 = scmp.ne.s32.totalorder %s676_s28, %s460_s5  ;;  %p462_p3 = pneg %p682_p13 }
  0x19   : > { %s465_s8 = scalar_lea.hbm %s809_s0, 512  ;;  %p466_p5 = scmp.lt.s32.totalorder %s676_s28, %s809_s0 }
  0x1a   : > { %p463_p4 = pnand %p462_p3, %p461_p2  ;;  %p467_p8 = scmp.lt.s32.totalorder %s465_s8, %s460_s5 }
  0x1c   : > { %p464_p7 = pneg %p463_p4  ;;  %p468_p10 = por %p467_p8, %p466_p5 }
  0x1e   : > { %p469_p9 = pnand %p468_p10, %p464_p7 }
  0x20   : > { %472 = shalt.err (!%p469_p9)
}
  0x21   : > { %s473_s17 = scalar_lea.vmem %s686_s30, 256  ;;  %s586_s19 = smov [#allocation2]  }
  0x22   : > { %p474_p0 = scmp.ne.s32.totalorder %s686_s30, %s473_s17  ;;  %s478_s26 = sshll.u32 %s586_s19, 4  ;;  %s479_s26 = int_to_ptr.vmem [resolvable:$false] %s478_s26 }
  0x23   : > { %s480_s27 = scalar_lea.vmem %s479_s26, 512  ;;  %p481_p1 = scmp.lt.s32.totalorder %s686_s30, %s479_s26 }
  0x24   : > { %p476_p2 = pnand %p474_p0, %p462_p3  ;;  %p482_p12 = scmp.lt.s32.totalorder %s480_s27, %s473_s17 }
  0x26   : > { %p477_p4 = pneg %p476_p2  ;;  %p483_p11 = por %p482_p12, %p481_p1 }
  0x28   : > { %p484_p5 = pnand %p483_p11, %p477_p4 }
  0x2a   : > { %487 = shalt.err (!%p484_p5)
}
  0x2b   : > { %414 = dma.hbm_to_vmem [thread:$0]  (!%p682_p13), %s676_s28, 256, %s686_s30, %s118_s4  }
  0x2c   : > { %p819_p9 = scmp.lt.s32.totalorder %s584_s12, 3  ;;  %p820_p0 = scmp.ge.s32.totalorder %s584_s12, 1 }
  0x2d   : > { %s728_s7 = scalar_lea.hbm %s810_s1, %s403_s24  ;;  %s140_s8 = scalar_lea.vmem [#allocation5], %s385_s25 }
  0x2e   : > { %p719_p7 = pnand %p820_p0, %p819_p9  ;;  %s148_s14 = sshll.u32 %s140_s8, 4  ;;  %s149_s14 = int_to_ptr.vmem [resolvable:$true] %s148_s14 }
  0x2f   : > { %s137_s28 = scalar_lea.sflag [#allocation6], %s667_s23  ;;  %s488_s30 = scalar_lea.hbm %s728_s7, 256 }
  0x30   : > { %s821_s29 = scalar_select %p719_p7, 1, 0 }
  0x31   : > { %p489_p11 = scmp.ne.s32.totalorder %s728_s7, %s488_s30  ;;  %s493_s17 = scalar_lea.hbm %s810_s1, 512 }
  0x32   : > { %p494_p8 = scmp.lt.s32.totalorder %s728_s7, %s810_s1  ;;  %p495_p10 = scmp.lt.s32.totalorder %s493_s17, %s488_s30 }
  0x33   : > { %p491_p12 = pnand %p489_p11, %p462_p3 }
  0x34   : > { %p496_p2 = por %p495_p10, %p494_p8 }
  0x35   : > { %p492_p1 = pneg %p491_p12 }
  0x37   : > { %p497_p4 = pnand %p496_p2, %p492_p1 }
  0x39   : > { %500 = shalt.err (!%p497_p4)
}
  0x3a   : > { %s501_s25 = scalar_lea.vmem %s149_s14, 256  ;;  %s587_s23 = smov [#allocation5]  }
  0x3b   : > { %p502_p5 = scmp.ne.s32.totalorder %s149_s14, %s501_s25  ;;  %s506_s26 = sshll.u32 %s587_s23, 4  ;;  %s507_s26 = int_to_ptr.vmem [resolvable:$false] %s506_s26 }
  0x3c   : > { %s508_s27 = scalar_lea.vmem %s507_s26, 512  ;;  %p509_p11 = scmp.lt.s32.totalorder %s149_s14, %s507_s26 }
  0x3d   : > { %p504_p9 = pnand %p502_p5, %p462_p3  ;;  %p510_p12 = scmp.lt.s32.totalorder %s508_s27, %s501_s25 }
  0x3f   : > { %p505_p0 = pneg %p504_p9  ;;  %p511_p6 = por %p510_p12, %p509_p11 }
  0x41   : > { %p512_p7 = pnand %p511_p6, %p505_p0 }
  0x43   : > { %515 = shalt.err (!%p512_p7)
}
  0x44   : > { %417 = dma.hbm_to_vmem [thread:$0]  (!%p682_p13), %s728_s7, 256, %s149_s14, %s137_s28  }
  0x45   : > { %p822_p1 = scmp.ne.s32.totalorder %s821_s29, 0 }
  0x46   : > { %s754_s5 = sand.u32 (!%p822_p1), 1, %s576_s10   ;;  %p823_p3 = scmp.ne.s32.totalorder (!%p822_p1), %s815_s20, 0 }
  0x47   : > { %157 = sbr.rel (%p822_p1) target bundleno = 234 (0xea), region = 28  ;;  %s392_s6 = sshll.u32 (!%p822_p1), %s754_s5, 4 }
  0x48   : > { %s160_s8 = scalar_lea.sflag (!%p822_p1), [#allocation3], %s754_s5  ;;  %s163_s30 = scalar_lea.vmem (!%p822_p1), [#allocation2], %s392_s6 }
  0x4c   : > { %559 = dma.done.wait (%p823_p3), %s160_s8, 256  }
  0x4d   : > { %561 = vsyncadd (%p823_p3), %s160_s8, 4294967040  ;;  %s169_s3 = scalar_lea.sflag [#allocation6], %s754_s5  ;;  %s172_s7 = scalar_lea.vmem [#allocation5], %s392_s6 }
  0x4e   : > { %563 = dma.done.wait (%p823_p3), %s169_s3, 256  }
  0x4f   : > { %565 = vsyncadd (%p823_p3), %s169_s3, 4294967040  ;;  %v241_v0 = vld [vmem:[%s172_s7] sm:$0xff]  ;;  %s588_s29 = smov 1   ;;  %v242_v2 = vld [vmem:[%s172_s7 + $0x8] sm:$0xff]  ;;  %s589_s14 = smov 127   ;;  %v198_v4 = vlaneseq }
  0x50   : > { %v211_v1 = vld [vmem:[%s163_s30] sm:$0xff]  ;;  %243 = vrot.lane.b32.xlu1 %v241_v0, %s588_s29  ;;  %v212_v3 = vld [vmem:[%s163_s30 + $0x8] sm:$0xff]  ;;  %v590_v11 = vmov 1.7225001   ;;  %v591_v13 = vmov -0.85  }
  0x51   : > { %213 = vrot.lane.b32.xlu0 %v211_v1, %s588_s29  ;;  %v199_v5 = vand.u32 127, %v198_v4  ;;  %v255_v19 = vmul.f32 1.7225001, %v241_v0  ;;  %v227_v20 = vmul.f32 1.7225001, %v211_v1  ;;  %s394_s20 = sshll.u32 %s754_s5, 3 }
  0x52   : > { %s400_s28 = sshll.u32 %s629_s13, 7  ;;  %s197_s4 = scalar_lea.vmem [#allocation7], %s394_s20 }
  0x53   : > { %v200_v6 = vadd.s32 128, %v199_v5  ;;  %vm201_vm1 = vcmp.eq.s32.totalorder %v199_v5, 0  ;;  %vm217_vm2 = vcmp.lt.s32.totalorder %v199_v5, 1  ;;  %vm224_vm3 = vcmp.lt.s32.totalorder %v199_v5, 127  ;;  %s289_s16 = sshll.u32 %s197_s4, 4  ;;  %s287_s19 = scalar_lea.hbm %s811_s2, %s400_s28  ;;  %s290_s16 = int_to_ptr.vmem [resolvable:$true] %s289_s16 }
  0x54   : > { %245 = vrot.lane.b32.xlu1 %v242_v2, %s588_s29  ;;  %v207_v14 = vsel %vm201_vm1, 0.0, %v591_v13  ;;  %s276_s25 = scalar_lea.sflag [#allocation4], %s754_s5  ;;  %s516_s23 = scalar_lea.vmem %s290_s16, 128 }
  0x55   : > { %215 = vrot.lane.b32.xlu0 %v212_v3, %s588_s29  ;;  %vm204_vm0 = vcmp.eq.s32.totalorder %v200_v6, 255  ;;  %p517_p6 = scmp.ne.s32.totalorder %s290_s16, %s516_s23  ;;  %p824_p13 = scmp.ne.s32.totalorder %s816_s21, 0 }
  0x56   : > { %v206_v12 = vsel %vm204_vm0, 1.0, %v590_v11  ;;  %v210_v21 = vsel %vm204_vm0, 0.0, %v591_v13  ;;  %s592_s26 = smov [#allocation7]  }
  0x57   : > { %v256_v22 = vmul.f32 %v242_v2, %v206_v12  ;;  %v228_v23 = vmul.f32 %v212_v3, %v206_v12  ;;  %p518_p7 = pnand %p517_p6, %p824_p13  ;;  %s520_s27 = sshll.u32 %s592_s26, 4  ;;  %s521_s27 = int_to_ptr.vmem [resolvable:$false] %s520_s27 }
  0x58   : > { %222 = vrot.lane.b32.xlu1 %v212_v3, %s589_s14  ;;  %s522_s13 = scalar_lea.vmem %s521_s27, 256  ;;  %p523_p10 = scmp.lt.s32.totalorder %s290_s16, %s521_s27 }
  0x59   : > { %220 = vrot.lane.b32.xlu0 %v211_v1, %s589_s14  ;;  %p519_p8 = pneg %p518_p7  ;;  %p524_p2 = scmp.lt.s32.totalorder %s522_s13, %s516_s23 }
  0x5b   : > { %p525_p4 = por %p524_p2, %p523_p10 }
  0x5c   : > { %251 = vrot.lane.b32.xlu1 %v242_v2, %s589_s14 }
  0x5d   : > { %249 = vrot.lane.b32.xlu0 %v241_v0, %s589_s14  ;;  %p526_p5 = pnand %p525_p4, %p519_p8 }
  0xc2   : > { %v244_v7 = vpop.permute.xlu1 %243 }
  0xc3   : > { %v214_v8 = vpop.permute.xlu0 %213 }
  0xc6   : > { %v246_v9 = vpop.permute.xlu1 %245 }
  0xc7   : > { %v216_v10 = vpop.permute.xlu0 %215  ;;  %v247_v17 = vsel %vm217_vm2, %v244_v7, %v246_v9  ;;  %v248_v18 = vsel %vm217_vm2, %v246_v9, %v244_v7 }
  0xc8   : > { %v218_v15 = vsel %vm217_vm2, %v214_v8, %v216_v10  ;;  %v219_v16 = vsel %vm217_vm2, %v216_v10, %v214_v8  ;;  %v257_v28 = vmul.f32 %v248_v18, %v207_v14  ;;  %v258_v29 = vmul.f32 -0.85, %v247_v17 }
  0xc9   : > { %v229_v24 = vmul.f32 %v219_v16, %v207_v14  ;;  %v230_v25 = vmul.f32 -0.85, %v218_v15 }
  0xca   : > { %v223_v26 = vpop.permute.xlu1 %222  ;;  %v259_v38 = vadd.f32 %v257_v28, %v255_v19  ;;  %v260_v39 = vadd.f32 %v258_v29, %v256_v22 }
  0xcb   : > { %v221_v27 = vpop.permute.xlu0 %220  ;;  %v231_v34 = vadd.f32 %v229_v24, %v227_v20  ;;  %v232_v35 = vadd.f32 %v230_v25, %v228_v23 }
  0xcc   : > { %v225_v30 = vsel %vm224_vm3, %v221_v27, %v223_v26  ;;  %v226_v31 = vsel %vm224_vm3, %v223_v26, %v221_v27 }
  0xcd   : > { %v233_v32 = vmul.f32 -0.85, %v225_v30  ;;  %v234_v33 = vmul.f32 %v226_v31, %v210_v21 }
  0xce   : > { %v252_v36 = vpop.permute.xlu1 %251 }
  0xcf   : > { %v250_v37 = vpop.permute.xlu0 %249  ;;  %v235_v42 = vadd.f32 %v233_v32, %v231_v34  ;;  %v236_v43 = vadd.f32 %v234_v33, %v232_v35 }
  0xd0   : > { %v253_v40 = vsel %vm224_vm3, %v250_v37, %v252_v36  ;;  %v254_v41 = vsel %vm224_vm3, %v252_v36, %v250_v37 }
  0xd1   : > { %v261_v44 = vmul.f32 -0.85, %v253_v40  ;;  %v262_v45 = vmul.f32 %v254_v41, %v210_v21  ;;  %v395_v48 = vclamps-f32 %v235_v42, 1.0  ;;  %v396_v49 = vclamps-f32 %v236_v43, 1.0 }
  0xd3   : > { %v263_v46 = vadd.f32 %v261_v44, %v259_v38  ;;  %v264_v47 = vadd.f32 %v262_v45, %v260_v39 }
  0xd5   : > { %v397_v50 = vclamps-f32 %v263_v46, 1.0  ;;  %v398_v51 = vclamps-f32 %v264_v47, 1.0 }
  0xd7   : > { %v269_v52 = vsub.f32 %v395_v48, %v397_v50  ;;  %v270_v53 = vsub.f32 %v396_v49, %v398_v51 }
  0xd9   : > { %v271_v54 = vmul.f32 %v269_v52, %v269_v52  ;;  %v272_v55 = vmul.f32 %v270_v53, %v270_v53 }
  0xdb   : > { %v273_v56 = vadd.f32 %v272_v55, %v271_v54 }
  0xdd   : > { %274 = vst [vmem:[%s197_s4] sm:$0xff] %v273_v56 }
  0xde   : > { %529 = shalt.err (!%p526_p5)
}
  0xdf   : > { %s530_s6 = scalar_lea.hbm %s287_s19, 128  ;;  %s534_s30 = scalar_lea.hbm %s811_s2, 256 }
  0xe0   : > { %p531_p9 = scmp.ne.s32.totalorder %s287_s19, %s530_s6  ;;  %p535_p12 = scmp.lt.s32.totalorder %s287_s19, %s811_s2 }
  0xe1   : > { %p536_p1 = scmp.lt.s32.totalorder %s534_s30, %s530_s6 }
  0xe2   : > { %p532_p0 = pnand %p531_p9, %p824_p13 }
  0xe3   : > { %p537_p3 = por %p536_p1, %p535_p12 }
  0xe4   : > { %p533_p11 = pneg %p532_p0 }
  0xe6   : > { %p538_p6 = pnand %p537_p3, %p533_p11 }
  0xe8   : > { %541 = shalt.err (!%p538_p6)
}
  0xe9   : > { %409 = dma.vmem_to_hbm [thread:$0]  (%p824_p13), %s290_s16, 128, %s287_s19, %s276_s25  }
  0xea PF: > { %s301_s29 = sand.u32 1, %s572_s9   ;;  %p825_p7 = scmp.ne.s32.totalorder %s817_s22, 0 }
  0xeb   : > { %p826_p8 = scmp.ge.s32.totalorder %s584_s12, 2  ;;  %s302_s14 = scalar_lea.sflag [#allocation4], %s301_s29 }
  0xed   : > { %p419_p10 = pnand %p826_p8, %p825_p7 }
  0xef   : > { %p420_p2 = pneg %p419_p10 }
  0xf1   : > { %567 = dma.done.wait (%p420_p2), %s302_s14, 128  }
  0xf2   : > { %569 = vsyncadd (%p420_p2), %s302_s14, 4294967168  ;;  %p18_p4 = scmp.ge.s32.totalorder %s633_s15, 4   ;;  %s827_s9 = smov %s576_s10 }
  0xf3   : > { %s828_s10 = smov %s580_s11  ;;  %s829_s11 = smov %s645_s18 }
  0xf4   : > { %s830_s12 = smov %s633_s15  ;;  %20 = sbr.rel (!%p18_p4) target bundleno = 7 (0x7), region = 86 }
  0xf9   :  { %307 = vsyncpa [#allocation3], 1 }
  0xfa   :  { %309 = vsyncpa [#allocation3 + $0x1], 1 }
  0xfb   :  { %310 = vsyncpa [#allocation6], 1 }
  0xfc   :  { %312 = vsyncpa [#allocation6 + $0x1], 1 }
  0xfd   :  { %313 = vsyncpa [#allocation4], 1 }
  0xfe   :  { %315 = vsyncpa [#allocation4 + $0x1], 1 }

</bundles_post_ra>
